<compile_context>
chip_gen: v7x
topology: tpu7x:2x2x1
jax: 0.10.0
libtpu: 0.0.40
codegen_flags: <defaults>
</compile_context>

<pallas_src>
import functools

import jax
import jax.numpy as jnp
from jax.experimental import pallas as pl
from jax.experimental.pallas import tpu as pltpu

EPS = 1e-5
NEG_SLOPE = 0.2
LANE = 128
HID_TILE = 128  # tile width over the hidden (num_units) dimension


def _round_up(n, m):
    return (n + m - 1) // m * m


# ----------------------------------------------------------------------------
# Kernel: grid = (num_units_padded // HID_TILE,), reduction axis ("arbitrary").
# ----------------------------------------------------------------------------
def code_disc_kernel(x_ref,
                     w1_ref, g1_ref, be1_ref,
                     w2_ref, g2_ref, be2_ref,
                     w3_ref, b3_ref,
                     out_ref,
                     acc_ref):
    k = pl.program_id(0)
    inv_b = jnp.float32(1.0 / x_ref.shape[0])

    @pl.when(k == 0)
    def _():
        acc_ref[...] = jnp.zeros_like(acc_ref)

    def bn_lrelu(h, gamma, beta):
        # Fused training-mode BatchNorm1d + LeakyReLU(0.2), single pass.
        s = jnp.sum(h, axis=0, keepdims=True)
        sq = jnp.sum(h * h, axis=0, keepdims=True)
        mean = s * inv_b
        var = sq * inv_b - mean * mean              # biased variance
        scale = gamma * jax.lax.rsqrt(var + EPS)    # padded lanes: gamma=0 -> 0
        shift = beta - mean * scale
        y = h * scale + shift
        return jnp.maximum(y, NEG_SLOPE * y)        # LeakyReLU, single vmax

    # l1 tile: x @ W1[:, k-tile] -> fused BN -> LeakyReLU (per-feature stats,
    # so a 128-wide feature tile is fully independent).
    h1 = jnp.dot(x_ref[...], w1_ref[...], preferred_element_type=jnp.float32)
    h1 = bn_lrelu(h1, g1_ref[...], be1_ref[...])

    # l2 partial product, accumulated in f32 scratch across the k grid.
    acc_ref[...] += jnp.dot(h1.astype(jnp.bfloat16), w2_ref[...],
                            preferred_element_type=jnp.float32)

    @pl.when(k == pl.num_programs(0) - 1)
    def _():
        # l2 BN + LeakyReLU, then l3 (N=1): VPU multiply + lane reduction
        # instead of a 1-column matmul.
        h2 = bn_lrelu(acc_ref[...], g2_ref[...], be2_ref[...])
        out_ref[...] = (jnp.sum(h2 * w3_ref[...], axis=-1, keepdims=True)
                        + b3_ref[...])


# ----------------------------------------------------------------------------
# One-time parameter preparation: lane-pad + cast OUTSIDE the per-step forward.
# ----------------------------------------------------------------------------
def prepare_params(params):
    code_size, num_units = params["w1"].shape
    cp = _round_up(code_size, LANE)
    np_ = _round_up(num_units, LANE)

    def pad2(a, rows, cols):
        return jnp.pad(a, ((0, rows - a.shape[0]), (0, cols - a.shape[1])))

    # Padded lanes carry zeros end-to-end (W/gamma/beta/W3 padded with zeros),
    # so they never leak into BN stats or the final reduction.
    return {
        "w1": pad2(params["w1"], cp, np_).astype(jnp.bfloat16),
        "w2": pad2(params["w2"], np_, np_).astype(jnp.bfloat16),
        "g1": pad2(params["g1"], 1, np_),
        "be1": pad2(params["be1"], 1, np_),
        "g2": pad2(params["g2"], 1, np_),
        "be2": pad2(params["be2"], 1, np_),
        "w3": pad2(params["w3"].reshape(1, num_units), 1, np_),
        "b3": params["b3"].reshape(1, 1),
    }


# ----------------------------------------------------------------------------
# Forward wrapper: only x is padded/cast per call (weights are pre-prepared).
# ----------------------------------------------------------------------------
@jax.jit
def code_discriminator(x, prepped):
    B = x.shape[0]
    cp, np_ = prepped["w1"].shape
    nk = np_ // HID_TILE

    x_p = jnp.pad(x, ((0, 0), (0, cp - x.shape[1]))).astype(jnp.bfloat16)

    in_specs = [
        pl.BlockSpec((B, cp), lambda k: (0, 0)),           # x (resident)
        pl.BlockSpec((cp, HID_TILE), lambda k: (0, k)),    # W1 column tile
        pl.BlockSpec((1, HID_TILE), lambda k: (0, k)),     # gamma1 tile
        pl.BlockSpec((1, HID_TILE), lambda k: (0, k)),     # beta1 tile
        pl.BlockSpec((HID_TILE, np_), lambda k: (k, 0)),   # W2 row tile
        pl.BlockSpec((1, np_), lambda k: (0, 0)),          # gamma2 (resident)
        pl.BlockSpec((1, np_), lambda k: (0, 0)),          # beta2 (resident)
        pl.BlockSpec((1, np_), lambda k: (0, 0)),          # w3 row (resident)
        pl.BlockSpec((1, 1), lambda k: (0, 0)),            # b3
    ]
    out_specs = pl.BlockSpec((B, 1), lambda k: (0, 0))

    flops = 2 * B * (cp * np_ + np_ * np_ + np_) + 10 * B * np_
    bytes_accessed = (B * cp * 2 + cp * np_ * 2 + np_ * np_ * 2
                      + 5 * np_ * 4 + B * cp * 4 + B * 4)

    return pl.pallas_call(
        code_disc_kernel,
        out_shape=jax.ShapeDtypeStruct((B, 1), jnp.float32),
        grid_spec=pltpu.PrefetchScalarGridSpec(
            num_scalar_prefetch=0,
            grid=(nk,),
            in_specs=in_specs,
            out_specs=out_specs,
            scratch_shapes=[pltpu.VMEM((B, np_), jnp.float32)],
        ),
        compiler_params=pltpu.CompilerParams(
            dimension_semantics=("arbitrary",)),
        cost_estimate=pl.CostEstimate(
            flops=flops,
            transcendentals=2 * np_,
            bytes_accessed=bytes_accessed),
    )(x_p,
      prepped["w1"], prepped["g1"], prepped["be1"],
      prepped["w2"], prepped["g2"], prepped["be2"],
      prepped["w3"], prepped["b3"])


# ----------------------------------------------------------------------------
# Parameter init (mirrors PyTorch default Linear init) and references.
# ----------------------------------------------------------------------------
def init_params(key, code_size, num_units):
    ks = jax.random.split(key, 6)

    def linear(kw, kb, fan_in, fan_out):
        bound = 1.0 / jnp.sqrt(fan_in)
        # PyTorch stores (out, in); we keep (in, out) so the kernel does x @ W.
        w = jax.random.uniform(kw, (fan_in, fan_out), jnp.float32, -bound, bound)
        b = jax.random.uniform(kb, (1, fan_out), jnp.float32, -bound, bound)
        return w, b

    w1, b1 = linear(ks[0], ks[1], code_size, num_units)
    w2, b2 = linear(ks[2], ks[3], num_units, num_units)
    w3, b3 = linear(ks[4], ks[5], num_units, 1)
    return {
        "w1": w1, "b1": b1,
        "g1": jnp.ones((1, num_units), jnp.float32),
        "be1": jnp.zeros((1, num_units), jnp.float32),
        "w2": w2, "b2": b2,
        "g2": jnp.ones((1, num_units), jnp.float32),
        "be2": jnp.zeros((1, num_units), jnp.float32),
        "w3": w3, "b3": b3,
    }


def _leaky_relu(x):
    return jnp.maximum(x, NEG_SLOPE * x)


def _bn_train_ref(x, gamma, beta):
    mean = jnp.mean(x, axis=0, keepdims=True)
    var = jnp.mean((x - mean) ** 2, axis=0, keepdims=True)
    return (x - mean) * jax.lax.rsqrt(var + EPS) * gamma + beta


def reference_forward_f32(x, p):
    """Exact module semantics in f32 (with the pre-BN biases)."""
    h1 = _leaky_relu(_bn_train_ref(x @ p["w1"] + p["b1"], p["g1"], p["be1"]))
    h2 = _leaky_relu(_bn_train_ref(h1 @ p["w2"] + p["b2"], p["g2"], p["be2"]))
    return h2 @ p["w3"] + p["b3"]


def reference_forward_bf16(x, p):
    """Mirrors the kernel's numerics (bf16 matmuls, fused BN, dropped b1/b2)."""
    def bn_lrelu(h, gamma, beta):
        mean = jnp.mean(h, axis=0, keepdims=True)
        var = jnp.mean(h * h, axis=0, keepdims=True) - mean * mean
        scale = gamma * jax.lax.rsqrt(var + EPS)
        shift = beta - mean * scale
        return _leaky_relu(h * scale + shift)

    h1 = jnp.dot(x.astype(jnp.bfloat16), p["w1"].astype(jnp.bfloat16),
                 preferred_element_type=jnp.float32)
    h1 = bn_lrelu(h1, p["g1"], p["be1"])
    h2 = jnp.dot(h1.astype(jnp.bfloat16), p["w2"].astype(jnp.bfloat16),
                 preferred_element_type=jnp.float32)
    h2 = bn_lrelu(h2, p["g2"], p["be2"])
    return jnp.sum(h2 * p["w3"].reshape(1, -1), axis=-1, keepdims=True) + p["b3"]


if __name__ == "__main__":
    # Small shapes consistent with the module (real model: code_size=100,
    # num_units=750).  100 -> 128 and 200 -> 256 exercise padding + a 2-step
    # hidden-dim grid.
    batch, code_size, num_units = 16, 100, 200

    key = jax.random.PRNGKey(0)
    k_x, k_p = jax.random.split(key)
    x = jax.random.normal(k_x, (batch, code_size), dtype=jnp.float32)
    params = init_params(k_p, code_size, num_units)

    prepped = prepare_params(params)          # one-time pad/cast (outside step)
    out = jax.block_until_ready(code_discriminator(x, prepped))
    assert out.shape == (batch, 1)

    # Tight check vs. a reference that mirrors the kernel's bf16/fused-BN path.
    ref_bf16 = reference_forward_bf16(x, params)
    assert jnp.allclose(out, ref_bf16, atol=1e-3, rtol=1e-3), (
        float(jnp.max(jnp.abs(out - ref_bf16))))

    # Loose check vs. exact f32 module semantics (bf16 matmul error budget).
    ref_f32 = reference_forward_f32(x, params)
    assert jnp.allclose(out, ref_f32, atol=5e-2, rtol=5e-2), (
        float(jnp.max(jnp.abs(out - ref_f32))))

    print("KERNEL_OK")
</pallas_src>

<mosaic_0001>
module attributes {stable_mosaic.version = 11 : i64} {
  func.func @code_disc_kernel(%arg0: i32, %arg1: memref<16x128xbf16, #tpu.memory_space<vmem>>, %arg2: memref<128x128xbf16, #tpu.memory_space<vmem>>, %arg3: memref<1x128xf32, #tpu.memory_space<vmem>>, %arg4: memref<1x128xf32, #tpu.memory_space<vmem>>, %arg5: memref<128x256xbf16, #tpu.memory_space<vmem>>, %arg6: memref<1x256xf32, #tpu.memory_space<vmem>>, %arg7: memref<1x256xf32, #tpu.memory_space<vmem>>, %arg8: memref<1x256xf32, #tpu.memory_space<vmem>>, %arg9: memref<1x1xf32, #tpu.memory_space<vmem>>, %arg10: memref<16x1xf32, #tpu.memory_space<vmem>>, %arg11: memref<16x256xf32, #tpu.memory_space<vmem>>) attributes {dimension_semantics = [#tpu.dimension_semantics<arbitrary>], iteration_bounds = array<i64: 2>, scalar_prefetch = 0 : i64, scratch_operands = 1 : i64, tpu.core_type = #tpu.core_type<tc>, window_params = [{pipeline_mode = #tpu.pipeline_mode<synchronous>, transform_indices = @transform_0, window_bounds = array<i64: 16, 128>}, {transform_indices = @transform_1, window_bounds = array<i64: 128, 128>}, {transform_indices = @transform_2, window_bounds = array<i64: 1, 128>}, {transform_indices = @transform_3, window_bounds = array<i64: 1, 128>}, {transform_indices = @transform_4, window_bounds = array<i64: 128, 256>}, {pipeline_mode = #tpu.pipeline_mode<synchronous>, transform_indices = @transform_5, window_bounds = array<i64: 1, 256>}, {pipeline_mode = #tpu.pipeline_mode<synchronous>, transform_indices = @transform_6, window_bounds = array<i64: 1, 256>}, {pipeline_mode = #tpu.pipeline_mode<synchronous>, transform_indices = @transform_7, window_bounds = array<i64: 1, 256>}, {pipeline_mode = #tpu.pipeline_mode<synchronous>, transform_indices = @transform_8, window_bounds = array<i64: 1, 1>}, {pipeline_mode = #tpu.pipeline_mode<synchronous>, transform_indices = @transform_9, window_bounds = array<i64: 16, 1>}]} {
    %c0_i32 = arith.constant 0 : i32
    %0 = arith.cmpi eq, %arg0, %c0_i32 : i32
    %1 = arith.extui %0 : i1 to i32
    %c0_i32_0 = arith.constant 0 : i32
    %2 = arith.cmpi ne, %1, %c0_i32_0 : i32
    scf.if %2 {
      %cst_23 = arith.constant 0.000000e+00 : f32
      %41 = vector.broadcast %cst_23 : f32 to vector<16x256xf32>
      %c0_24 = arith.constant 0 : index
      %c0_25 = arith.constant 0 : index
      %42 = vector.load %arg11[%c0_24, %c0_25] : memref<16x256xf32, #tpu.memory_space<vmem>>, vector<16x256xf32>
      tpu.vector_store %arg11[%c0_24, %c0_25], %41 {strides = array<i32>} : memref<16x256xf32, #tpu.memory_space<vmem>>, vector<16x256xf32>,
    } else {
    }
    %c0 = arith.constant 0 : index
    %c0_1 = arith.constant 0 : index
    %3 = vector.load %arg1[%c0, %c0_1] : memref<16x128xbf16, #tpu.memory_space<vmem>>, vector<16x128xbf16>
    %c0_2 = arith.constant 0 : index
    %c0_3 = arith.constant 0 : index
    %4 = vector.load %arg2[%c0_2, %c0_3] : memref<128x128xbf16, #tpu.memory_space<vmem>>, vector<128x128xbf16>
    %cst = arith.constant dense<0.000000e+00> : vector<16x128xf32>
    %5 = tpu.matmul %3, %4, %cst {dimension_numbers = #tpu.dot_dimension_numbers<[1], [0], [0], [1], [0, 0, 1, 1], [], []>} : vector<16x128xbf16>, vector<128x128xbf16>, vector<16x128xf32> -> vector<16x128xf32>
    %c0_4 = arith.constant 0 : index
    %c0_5 = arith.constant 0 : index
    %6 = vector.load %arg3[%c0_4, %c0_5] : memref<1x128xf32, #tpu.memory_space<vmem>>, vector<1x128xf32>
    %c0_6 = arith.constant 0 : index
    %c0_7 = arith.constant 0 : index
    %7 = vector.load %arg4[%c0_6, %c0_7] : memref<1x128xf32, #tpu.memory_space<vmem>>, vector<1x128xf32>
    %cst_8 = arith.constant dense<0.000000e+00> : vector<128xf32>
    %8 = vector.multi_reduction <add>, %5, %cst_8 [0] : vector<16x128xf32> to vector<128xf32>
    %9 = vector.shape_cast %8 : vector<128xf32> to vector<1x128xf32>
    %10 = arith.mulf %5, %5 : vector<16x128xf32>
    %cst_9 = arith.constant dense<0.000000e+00> : vector<128xf32>
    %11 = vector.multi_reduction <add>, %10, %cst_9 [0] : vector<16x128xf32> to vector<128xf32>
    %12 = vector.shape_cast %11 : vector<128xf32> to vector<1x128xf32>
    %cst_10 = arith.constant 6.250000e-02 : f32
    %13 = vector.broadcast %cst_10 : f32 to vector<1x128xf32>
    %14 = arith.mulf %9, %13 : vector<1x128xf32>
    %cst_11 = arith.constant 6.250000e-02 : f32
    %15 = vector.broadcast %cst_11 : f32 to vector<1x128xf32>
    %16 = arith.mulf %12, %15 : vector<1x128xf32>
    %17 = arith.mulf %14, %14 : vector<1x128xf32>
    %18 = arith.subf %16, %17 : vector<1x128xf32>
    %cst_12 = arith.constant 9.99999974E-6 : f32
    %19 = vector.broadcast %cst_12 : f32 to vector<1x128xf32>
    %20 = arith.addf %18, %19 : vector<1x128xf32>
    %21 = math.rsqrt %20 : vector<1x128xf32>
    %22 = arith.mulf %6, %21 : vector<1x128xf32>
    %23 = arith.mulf %14, %22 : vector<1x128xf32>
    %24 = arith.subf %7, %23 : vector<1x128xf32>
    %25 = vector.broadcast %22 : vector<1x128xf32> to vector<16x128xf32>
    %26 = arith.mulf %5, %25 : vector<16x128xf32>
    %27 = vector.broadcast %24 : vector<1x128xf32> to vector<16x128xf32>
    %28 = arith.addf %26, %27 : vector<16x128xf32>
    %cst_13 = arith.constant 2.000000e-01 : f32
    %29 = vector.broadcast %cst_13 : f32 to vector<16x128xf32>
    %30 = arith.mulf %29, %28 : vector<16x128xf32>
    %31 = arith.maximumf %28, %30 : vector<16x128xf32>
    %c0_14 = arith.constant 0 : index
    %c0_15 = arith.constant 0 : index
    %32 = vector.load %arg11[%c0_14, %c0_15] : memref<16x256xf32, #tpu.memory_space<vmem>>, vector<16x256xf32>
    %33 = arith.truncf %31 : vector<16x128xf32> to vector<16x128xbf16>
    %c0_16 = arith.constant 0 : index
    %c0_17 = arith.constant 0 : index
    %34 = vector.load %arg5[%c0_16, %c0_17] : memref<128x256xbf16, #tpu.memory_space<vmem>>, vector<128x256xbf16>
    %cst_18 = arith.constant dense<0.000000e+00> : vector<16x256xf32>
    %35 = tpu.matmul %33, %34, %cst_18 {dimension_numbers = #tpu.dot_dimension_numbers<[1], [0], [0], [1], [0, 0, 1, 1], [], []>} : vector<16x128xbf16>, vector<128x256xbf16>, vector<16x256xf32> -> vector<16x256xf32>
    %36 = arith.addf %32, %35 : vector<16x256xf32>
    %c0_19 = arith.constant 0 : index
    %c0_20 = arith.constant 0 : index
    %37 = vector.load %arg11[%c0_19, %c0_20] : memref<16x256xf32, #tpu.memory_space<vmem>>, vector<16x256xf32>
    tpu.vector_store %arg11[%c0_19, %c0_20], %36 {strides = array<i32>} : memref<16x256xf32, #tpu.memory_space<vmem>>, vector<16x256xf32>,
    %c1_i32 = arith.constant 1 : i32
    %38 = arith.cmpi eq, %arg0, %c1_i32 : i32
    %39 = arith.extui %38 : i1 to i32
    %cst_21 = arith.constant 6.250000e-02 : f32
    %c0_i32_22 = arith.constant 0 : i32
    %40 = arith.cmpi ne, %39, %c0_i32_22 : i32
    scf.if %40 {
      %c0_23 = arith.constant 0 : index
      %c0_24 = arith.constant 0 : index
      %41 = vector.load %arg11[%c0_23, %c0_24] : memref<16x256xf32, #tpu.memory_space<vmem>>, vector<16x256xf32>
      %c0_25 = arith.constant 0 : index
      %c0_26 = arith.constant 0 : index
      %42 = vector.load %arg6[%c0_25, %c0_26] : memref<1x256xf32, #tpu.memory_space<vmem>>, vector<1x256xf32>
      %c0_27 = arith.constant 0 : index
      %c0_28 = arith.constant 0 : index
      %43 = vector.load %arg7[%c0_27, %c0_28] : memref<1x256xf32, #tpu.memory_space<vmem>>, vector<1x256xf32>
      %cst_29 = arith.constant dense<0.000000e+00> : vector<256xf32>
      %44 = vector.multi_reduction <add>, %41, %cst_29 [0] : vector<16x256xf32> to vector<256xf32>
      %45 = vector.shape_cast %44 : vector<256xf32> to vector<1x256xf32>
      %46 = arith.mulf %41, %41 : vector<16x256xf32>
      %cst_30 = arith.constant dense<0.000000e+00> : vector<256xf32>
      %47 = vector.multi_reduction <add>, %46, %cst_30 [0] : vector<16x256xf32> to vector<256xf32>
      %48 = vector.shape_cast %47 : vector<256xf32> to vector<1x256xf32>
      %49 = vector.broadcast %cst_21 : f32 to vector<1x256xf32>
      %50 = arith.mulf %45, %49 : vector<1x256xf32>
      %51 = vector.broadcast %cst_21 : f32 to vector<1x256xf32>
      %52 = arith.mulf %48, %51 : vector<1x256xf32>
      %53 = arith.mulf %50, %50 : vector<1x256xf32>
      %54 = arith.subf %52, %53 : vector<1x256xf32>
      %cst_31 = arith.constant 9.99999974E-6 : f32
      %55 = vector.broadcast %cst_31 : f32 to vector<1x256xf32>
      %56 = arith.addf %54, %55 : vector<1x256xf32>
      %57 = math.rsqrt %56 : vector<1x256xf32>
      %58 = arith.mulf %42, %57 : vector<1x256xf32>
      %59 = arith.mulf %50, %58 : vector<1x256xf32>
      %60 = arith.subf %43, %59 : vector<1x256xf32>
      %61 = vector.broadcast %58 : vector<1x256xf32> to vector<16x256xf32>
      %62 = arith.mulf %41, %61 : vector<16x256xf32>
      %63 = vector.broadcast %60 : vector<1x256xf32> to vector<16x256xf32>
      %64 = arith.addf %62, %63 : vector<16x256xf32>
      %cst_32 = arith.constant 2.000000e-01 : f32
      %65 = vector.broadcast %cst_32 : f32 to vector<16x256xf32>
      %66 = arith.mulf %65, %64 : vector<16x256xf32>
      %67 = arith.maximumf %64, %66 : vector<16x256xf32>
      %c0_33 = arith.constant 0 : index
      %c0_34 = arith.constant 0 : index
      %68 = vector.load %arg8[%c0_33, %c0_34] : memref<1x256xf32, #tpu.memory_space<vmem>>, vector<1x256xf32>
      %69 = vector.broadcast %68 : vector<1x256xf32> to vector<16x256xf32>
      %70 = arith.mulf %67, %69 : vector<16x256xf32>
      %cst_35 = arith.constant dense<0.000000e+00> : vector<16xf32>
      %71 = vector.multi_reduction <add>, %70, %cst_35 [1] : vector<16x256xf32> to vector<16xf32>
      %72 = vector.shape_cast %71 : vector<16xf32> to vector<16x1xf32>
      %c0_36 = arith.constant 0 : index
      %c0_37 = arith.constant 0 : index
      %73 = vector.load %arg9[%c0_36, %c0_37] : memref<1x1xf32, #tpu.memory_space<vmem>>, vector<1x1xf32>
      %74 = vector.broadcast %73 : vector<1x1xf32> to vector<16x1xf32>
      %75 = arith.addf %72, %74 : vector<16x1xf32>
      %c0_38 = arith.constant 0 : index
      %c0_39 = arith.constant 0 : index
      %76 = vector.load %arg10[%c0_38, %c0_39] : memref<16x1xf32, #tpu.memory_space<vmem>>, vector<16x1xf32>
      tpu.vector_store %arg10[%c0_38, %c0_39], %75 {strides = array<i32>} : memref<16x1xf32, #tpu.memory_space<vmem>>, vector<16x1xf32>,
    } else {
    }
    return
  }
  func.func @transform_0(%arg0: i32) -> (i32, i32) {
    %c0_i32 = arith.constant 0 : i32
    %c0_i32_0 = arith.constant 0 : i32
    %c0_i32_1 = arith.constant 0 : i32
    return %c0_i32, %c0_i32_0 : i32, i32
  }
  func.func @transform_1(%arg0: i32) -> (i32, i32) {
    %c0_i32 = arith.constant 0 : i32
    %c0_i32_0 = arith.constant 0 : i32
    return %c0_i32, %arg0 : i32, i32
  }
  func.func @transform_2(%arg0: i32) -> (i32, i32) {
    %c0_i32 = arith.constant 0 : i32
    %c0_i32_0 = arith.constant 0 : i32
    return %c0_i32, %arg0 : i32, i32
  }
  func.func @transform_3(%arg0: i32) -> (i32, i32) {
    %c0_i32 = arith.constant 0 : i32
    %c0_i32_0 = arith.constant 0 : i32
    return %c0_i32, %arg0 : i32, i32
  }
  func.func @transform_4(%arg0: i32) -> (i32, i32) {
    %c0_i32 = arith.constant 0 : i32
    %c0_i32_0 = arith.constant 0 : i32
    return %arg0, %c0_i32 : i32, i32
  }
  func.func @transform_5(%arg0: i32) -> (i32, i32) {
    %c0_i32 = arith.constant 0 : i32
    %c0_i32_0 = arith.constant 0 : i32
    %c0_i32_1 = arith.constant 0 : i32
    return %c0_i32, %c0_i32_0 : i32, i32
  }
  func.func @transform_6(%arg0: i32) -> (i32, i32) {
    %c0_i32 = arith.constant 0 : i32
    %c0_i32_0 = arith.constant 0 : i32
    %c0_i32_1 = arith.constant 0 : i32
    return %c0_i32, %c0_i32_0 : i32, i32
  }
  func.func @transform_7(%arg0: i32) -> (i32, i32) {
    %c0_i32 = arith.constant 0 : i32
    %c0_i32_0 = arith.constant 0 : i32
    %c0_i32_1 = arith.constant 0 : i32
    return %c0_i32, %c0_i32_0 : i32, i32
  }
  func.func @transform_8(%arg0: i32) -> (i32, i32) {
    %c0_i32 = arith.constant 0 : i32
    %c0_i32_0 = arith.constant 0 : i32
    %c0_i32_1 = arith.constant 0 : i32
    return %c0_i32, %c0_i32_0 : i32, i32
  }
  func.func @transform_9(%arg0: i32) -> (i32, i32) {
    %c0_i32 = arith.constant 0 : i32
    %c0_i32_0 = arith.constant 0 : i32
    %c0_i32_1 = arith.constant 0 : i32
    return %c0_i32, %c0_i32_0 : i32, i32
  }
}

</mosaic_0001>

<bundles_post_ra>
// kernel: code_discriminator.1
= control target key start
LH: loop header
LB: loop body
LE: loop exit
PB: predicated region body
PF: predicated region fallthrough
CT: control target
= control target key end

     0   :  { %s1563_s0 = inlined_call_operand.vmem [shape: bf16[16,128], index: 0, kind: input, shape index: {}]   ;;  %s1564_s1 = inlined_call_operand.hbm [shape: bf16[128,256], index: 1, kind: input, shape index: {}]   ;;  %s1565_s2 = inlined_call_operand.vmem [shape: f32[1,256], index: 2, kind: input, shape index: {}]   ;;  %s1566_s3 = inlined_call_operand.vmem [shape: f32[1,256], index: 3, kind: input, shape index: {}]   ;;  %s1567_s4 = inlined_call_operand.hbm [shape: bf16[256,256], index: 4, kind: input, shape index: {}]   ;;  %s1568_s5 = inlined_call_operand.vmem [shape: f32[1,256], index: 5, kind: input, shape index: {}]   ;;  %s1569_s6 = inlined_call_operand.vmem [shape: f32[1,256], index: 6, kind: input, shape index: {}]   ;;  %s1570_s7 = inlined_call_operand.vmem [shape: f32[1,256], index: 7, kind: input, shape index: {}]   ;;  %s1571_s8 = inlined_call_operand.<no memory space> [shape: f32[1,1], index: 8, kind: input, shape index: {}]   ;;  %s1572_s9 = inlined_call_operand.vmem [shape: f32[16,1], index: 9, kind: output, shape index: {}]  }
   0x1   :  { %1574 = sst [smem:[#allocation10_spill]] %s1564_s1  ;;  %v14_v0 = vstv %s1571_s8 }
   0x2   :  { %15 = vst [vmem:[#allocation3] sm:$0x1] %v14_v0 }
   0x3   :  { %16 = vsyncpa [#allocation5], 0 }
   0x4   :  { %18 = vsyncpa [#allocation5 + $0x1], 0 }
   0x5   :  { %19 = vsyncpa [#allocation7], 0 }
   0x6   :  { %21 = vsyncpa [#allocation7 + $0x1], 0  ;;  %s1305_s11 = smov 0   ;;  %s1307_s12 = smov 0  }
   0x7   :  { %s1309_s13 = smov 0   ;;  %s1311_s14 = smov 0  }
   0x8 LB: > { %s1324_s8 = sadd.s32 4294967295, %s1239_s14   ;;  %s1327_s15 = sadd.s32 1, %s1239_s14   ;;  %s1239_s14 = sphi %s1311_s14, %s1583_s14   ;;  %s1235_s13 = sphi %s1309_s13, %s1582_s13   ;;  %s1231_s12 = sphi %s1307_s12, %s1581_s12   ;;  %s1227_s11 = sphi %s1305_s11, %s1580_s11  }
   0x9   : > { %s52_s16 = ssub.s32 %s1239_s14, %s1327_s15  ;;  %s55_s17 = sadd.s32 1, %s1235_s13 }
   0xa   : > { %p53_p0 = scmp.eq.s32.totalorder %s52_s16, 0  ;;  %p62_p1 = scmp.ne.s32.totalorder %s1235_s13, %s1231_s12 }
   0xb   : > { %p63_p2 = scmp.eq.s32.totalorder %s1239_s14, 0  ;;  %p68_p3 = scmp.ne.s32.totalorder %s1231_s12, %s1227_s11 }
   0xc   : > { %s1337_s18 = scalar_select %p53_p0, %s1235_s13, %s55_s17  }
   0xd   : > { %p64_p4 = por %p63_p2, %p62_p1  ;;  %p69_p5 = scmp.eq.s32.totalorder %s1324_s8, 0 }
   0xe   : > { %p1060_p6 = scmp.lt.s32.totalorder %s1239_s14, 2  ;;  %s1346_s20 = sand.u32 1, %s1235_s13  }
   0xf   : > { %p1341_p7 = por %p69_p5, %p68_p3  ;;  %s979_s21 = sshll.u32 %s1346_s20, 6 }
  0x10   : > { %s980_s22 = sshll.u32 %s1239_s14, 6  ;;  %s1576_s1 = sld [smem:[#allocation10_spill]] }
  0x11   : > { %s1575_s19 = scalar_select %p1341_p7, 1, 0 }
  0x12   : > { %s294_s26 = scalar_lea.vmem [#allocation4], %s979_s21  ;;  %p1357_p8 = pnand %p1060_p6, %p64_p4 }
  0x13   : > { %s300_s27 = sshll.u32 %s294_s26, 4  ;;  %s291_s29 = scalar_lea.sflag [#allocation5], %s1346_s20  ;;  %s1355_s27 = int_to_ptr.vmem [resolvable:$true] %s300_s27 }
  0x14   : > { %p1143_p10 = pneg %p1357_p8 }
  0x16   : > { %s1353_s25 = scalar_lea.hbm %s1576_s1, %s980_s22  ;;  %s1146_s16 = scalar_lea.hbm %s1576_s1, 2048 }
  0x17   : > { %s1141_s30 = scalar_lea.hbm %s1353_s25, 1024  ;;  %p1147_p13 = scmp.lt.u32.totalorder %s1353_s25, %s1576_s1 }
  0x18   : > { %p1142_p9 = scmp.ne.s32.totalorder %s1353_s25, %s1141_s30  ;;  %p1148_p0 = scmp.lt.u32.totalorder %s1146_s16, %s1141_s30 }
  0x19   : > { %p1150_p2 = scmp.lt.u32.totalorder %s1141_s30, %s1353_s25 }
  0x1a   : > { %p1144_p11 = pnand %p1143_p10, %p1142_p9  ;;  %p1149_p1 = por %p1148_p0, %p1147_p13 }
  0x1c   : > { %p1145_p12 = pneg %p1144_p11  ;;  %p1151_p3 = por %p1150_p2, %p1149_p1 }
  0x1e   : > { %p1152_p4 = pnand %p1151_p3, %p1145_p12 }
  0x20   : > { %1155 = shalt.err (!%p1152_p4)
}
  0x21   : > { %s1156_s22 = scalar_lea.vmem %s1355_s27, 1024  ;;  %s1241_s23 = smov [#allocation4]  }
  0x22   : > { %p1157_p5 = scmp.ne.s32.totalorder %s1355_s27, %s1156_s22  ;;  %s1161_s24 = sshll.u32 %s1241_s23, 4  ;;  %s1162_s24 = int_to_ptr.vmem [resolvable:$false] %s1161_s24 }
  0x23   : > { %s1163_s26 = scalar_lea.vmem %s1162_s24, 2048  ;;  %p1164_p11 = scmp.lt.s32.totalorder %s1355_s27, %s1162_s24 }
  0x24   : > { %p1159_p6 = pnand %p1157_p5, %p1143_p10  ;;  %p1165_p13 = scmp.lt.s32.totalorder %s1163_s26, %s1156_s22 }
  0x26   : > { %p1160_p9 = pneg %p1159_p6  ;;  %p1166_p0 = por %p1165_p13, %p1164_p11 }
  0x28   : > { %p1167_p1 = pnand %p1166_p0, %p1160_p9 }
  0x2a   : > { %1170 = shalt.err (!%p1167_p1)
}
  0x2b   : > { %s1242_s30 = smov 128   ;;  %s1243_s10 = smov 64  }
  0x2c   : > { %s1244_s11 = smov 4   ;;  %p985_p12 = scmp.ge.s32.totalorder %s1239_s14, 1 }
  0x2d   : > { %1056 = dma.hbm_to_vmem [thread:$0]  (!%p1357_p8), %s1353_s25, 1024, %s1355_s27, %s291_s29, %s1242_s30, %s1243_s10, %s1244_s11  }
  0x2e   : > { %p342_p2 = scmp.lt.s32.totalorder %s1239_s14, 3  ;;  %s981_s16 = sshll.u32 %s1346_s20, 7 }
  0x2f   : > { %s1019_s21 = sshll.u32 %s1239_s14, 11  ;;  %s326_s22 = scalar_lea.vmem [#allocation6], %s981_s16 }
  0x30   : > { %p1393_p3 = pnand %p985_p12, %p342_p2  ;;  %s334_s23 = sshll.u32 %s326_s22, 4  ;;  %s1403_s23 = int_to_ptr.vmem [resolvable:$true] %s334_s23 }
  0x31   : > { %s1401_s1 = scalar_lea.hbm %s1567_s4, %s1019_s21  ;;  %s323_s25 = scalar_lea.sflag [#allocation7], %s1346_s20 }
  0x32   : > { %s1171_s27 = scalar_lea.hbm %s1401_s1, 2048  ;;  %s1176_s10 = scalar_lea.hbm %s1567_s4, 4096 }
  0x33   : > { %p1172_p4 = scmp.ne.s32.totalorder %s1401_s1, %s1171_s27  ;;  %p1177_p9 = scmp.lt.u32.totalorder %s1401_s1, %s1567_s4 }
  0x34   : > { %p1178_p11 = scmp.lt.u32.totalorder %s1176_s10, %s1171_s27  ;;  %p1180_p0 = scmp.lt.u32.totalorder %s1171_s27, %s1401_s1 }
  0x35   : > { %p1174_p5 = pnand %p1172_p4, %p1143_p10 }
  0x36   : > { %p1179_p13 = por %p1178_p11, %p1177_p9 }
  0x37   : > { %p1175_p6 = pneg %p1174_p5 }
  0x38   : > { %p1181_p1 = por %p1180_p0, %p1179_p13 }
  0x3a   : > { %p1182_p12 = pnand %p1181_p1, %p1175_p6 }
  0x3c   : > { %1185 = shalt.err (!%p1182_p12)
}
  0x3d   : > { %s1186_s21 = scalar_lea.vmem %s1403_s23, 2048  ;;  %s1245_s22 = smov [#allocation6]  }
  0x3e   : > { %p1187_p2 = scmp.ne.s32.totalorder %s1403_s23, %s1186_s21  ;;  %s1191_s24 = sshll.u32 %s1245_s22, 4  ;;  %s1192_s24 = int_to_ptr.vmem [resolvable:$false] %s1191_s24 }
  0x3f   : > { %s1193_s26 = scalar_lea.vmem %s1192_s24, 4096  ;;  %p1194_p7 = scmp.lt.s32.totalorder %s1403_s23, %s1192_s24 }
  0x40   : > { %p1189_p4 = pnand %p1187_p2, %p1143_p10  ;;  %p1195_p9 = scmp.lt.s32.totalorder %s1193_s26, %s1186_s21 }
  0x42   : > { %p1190_p5 = pneg %p1189_p4  ;;  %p1196_p11 = por %p1195_p9, %p1194_p7 }
  0x44   : > { %p1197_p13 = pnand %p1196_p11, %p1190_p5 }
  0x46   : > { %1200 = shalt.err (!%p1197_p13)
}
  0x47   : > { %s1246_s27 = smov 8   ;;  %346 = sbr.rel (%p1393_p3) target bundleno = 827 (0x33b), region = 56 }
  0x48   : > { %1059 = dma.hbm_to_vmem [thread:$0]  (!%p1357_p8), %s1401_s1, 2048, %s1403_s23, %s323_s25, %s1242_s30, %s1242_s30, %s1246_s27  }
  0x49   : > { %s348_s14 = sand.u32 (!%p1393_p3), 1, %s1231_s12   ;;  %p1579_p7 = scmp.ne.s32.totalorder (!%p1393_p3), %s1575_s19, 0 }
  0x4a   : > { %s986_s29 = sshll.u32 (!%p1393_p3), %s348_s14, 6  ;;  %s349_s10 = scalar_lea.sflag (!%p1393_p3), [#allocation5], %s348_s14 }
  0x4b   : > { %s1436_s11 = scalar_lea.vmem (!%p1393_p3), [#allocation4], %s986_s29 }
  0x4e   : > { %1218 = dma.done.wait (%p1579_p7), %s349_s10, 1024  }
  0x4f   : > { %1220 = vsyncadd (%p1579_p7), %s349_s10, 4294966272  ;;  %s987_s20 = sshll.u32 %s348_s14, 7  ;;  %s358_s28 = scalar_lea.sflag [#allocation7], %s348_s14 }
  0x50   : > { %s1442_s16 = scalar_lea.vmem [#allocation6], %s987_s20 }
  0x51   : > { %1222 = dma.done.wait (%p1579_p7), %s358_s28, 2048  }
  0x52   : > { %1224 = vsyncadd (%p1579_p7), %s358_s28, 4294965248  ;;  %p402_p8 = scmp.lt.s32.totalorder %s1324_s8, 1  ;;  %p988_p10 = scmp.ne.s32.totalorder %s1324_s8, 0 }
  0x53   : > { %v1247_v1 = vmov (!%p988_p10), 0.0  }
  0x54   : > { %s1450_s1 = scalar_select %p402_p8, %s1324_s8, 1 }
  0x55   : > { %413 = sbr.rel (%p988_p10) target bundleno = 92 (0x5c), region = 68  ;;  %414 = vst [vmem:[#allocation2] sm:$0xff] (!%p988_p10), %v1247_v1  ;;  %415 = vst [vmem:[#allocation2 + $0x8] sm:$0xff] (!%p988_p10), %v1247_v1 }
  0x56   : > { %s404_s23 = scalar_lea.vmem %s1565_s2, %s1450_s1  ;;  %s407_s22 = scalar_lea.vmem %s1566_s3, %s1450_s1  ;;  %416 = vst [vmem:[#allocation2 + $0x10] sm:$0xff] (!%p988_p10), %v1247_v1  ;;  %417 = vst [vmem:[#allocation2 + $0x18] sm:$0xff] (!%p988_p10), %v1247_v1 }
  0x5c PF: > { %v1102_v2 = vld [vmem:[%s1436_s11] sm:$0xff]   ;;  %v1248_v3 = vmov 0.0   ;;  %v1103_v4 = vld [vmem:[%s1436_s11 + $0x8] sm:$0xff]   ;;  %vm1249_vm0 = vmmov 0   ;;  %v1104_v5 = vld [vmem:[%s1436_s11 + $0x10] sm:$0xff]   ;;  %v1250_v28 = vmov 0   ;;  %v559_v54 = vlaneseq }
  0x5d   : > { %1029 = vmatprep.subr.bf16.mxu0 %v1248_v3  ;;  %1045 = vmatprep.mubr.msk.bf16.mxu0 %vm1249_vm0, %v1248_v3  ;;  %v1105_v6 = vld [vmem:[%s1436_s11 + $0x18] sm:$0xff]   ;;  %v1106_v7 = vld [vmem:[%s1436_s11 + $0x20] sm:$0xff]   ;;  %v1107_v8 = vld [vmem:[%s1436_s11 + $0x28] sm:$0xff]   ;;  %p1014_p3 = scmp.ne.s32.totalorder %s1324_s8, 1 }
  0x5e   : > { %1030 = vmatpush3.bf16.msra.mxu0 %v1102_v2  ;;  %v1108_v9 = vld [vmem:[%s1436_s11 + $0x30] sm:$0xff]   ;;  %v1109_v10 = vld [vmem:[%s1436_s11 + $0x38] sm:$0xff]   ;;  %v1111_v12 = vld [vmem:[%s1442_s16 + $0x4] ss:$8 sps:$4 sm:$0xff]   ;;  %711 = vmatprep.mubr.bf16.mxu1 %v1250_v28  ;;  %v1488_v55 = vshrl.u32 %v559_v54, 7  ;;  %vm893_vm1 = vcmask (!%p1014_p3), 7168  }
  0x5f   : > { %1031 = vmatprep.subr.bf16.mxu0 %v1248_v3  ;;  %v1110_v11 = vld [vmem:[%s1563_s0] sm:$0xff]   ;;  %679 = vmatprep.subr.bf16.mxu1 %v1111_v12  ;;  %v1116_v15 = vld [vmem:[%s1442_s16 + $0x10] ss:$8 sps:$4 sm:$0xff]  }
  0x60   : > { %v1113_v13 = vld [vmem:[%s1442_s16] ss:$8 sps:$4 sm:$0xff]   ;;  %v1114_v14 = vld [vmem:[%s1442_s16 + $0x14] ss:$8 sps:$4 sm:$0xff]   ;;  %v1117_v16 = vld [vmem:[%s1442_s16 + $0x24] ss:$8 sps:$4 sm:$0xff]  }
  0x61   : > { %680 = vmatpush1.bf16.msra.mxu1 %v1113_v13  ;;  %v1119_v17 = vld [vmem:[%s1442_s16 + $0x20] ss:$8 sps:$4 sm:$0xff]   ;;  %v1120_v18 = vld [vmem:[%s1442_s16 + $0x34] ss:$8 sps:$4 sm:$0xff]   ;;  %v1122_v19 = vld [vmem:[%s1442_s16 + $0x30] ss:$8 sps:$4 sm:$0xff]  }
  0x62   : > { %1032 = vmatpush3.bf16.msra.mxu0 %v1103_v4  ;;  %681 = vmatprep.subr.bf16.mxu1 %v1114_v14  ;;  %v1123_v20 = vld [vmem:[%s1442_s16 + $0x44] ss:$8 sps:$4 sm:$0xff]   ;;  %v1125_v21 = vld [vmem:[%s1442_s16 + $0x40] ss:$8 sps:$4 sm:$0xff]   ;;  %v1126_v22 = vld [vmem:[%s1442_s16 + $0x54] ss:$8 sps:$4 sm:$0xff]  }
  0x63   : > { %1033 = vmatprep.subr.bf16.mxu0 %v1248_v3  ;;  %v1128_v23 = vld [vmem:[%s1442_s16 + $0x50] ss:$8 sps:$4 sm:$0xff]   ;;  %v1129_v24 = vld [vmem:[%s1442_s16 + $0x64] ss:$8 sps:$4 sm:$0xff]   ;;  %v1131_v25 = vld [vmem:[%s1442_s16 + $0x60] ss:$8 sps:$4 sm:$0xff]  }
  0x64   : > { %v1132_v26 = vld [vmem:[%s1442_s16 + $0x74] ss:$8 sps:$4 sm:$0xff]   ;;  %v1134_v27 = vld [vmem:[%s1442_s16 + $0x70] ss:$8 sps:$4 sm:$0xff]   ;;  %v1496_v57 = vsub.s32 0, %v1488_v55 }
  0x65   : > { %682 = vmatpush1.bf16.msra.mxu1 %v1116_v15  ;;  %v531_v56 = vld [vmem:[%s404_s23] sm:$0x1]  ;;  %v580_v13 = vld [vmem:[#allocation2 + $0x10] sm:$0xff] }
  0x66   : > { %1034 = vmatpush3.bf16.msra.mxu0 %v1104_v5  ;;  %683 = vmatprep.subr.bf16.mxu1 %v1117_v16  ;;  %v532_v60 = vld [vmem:[%s407_s22] sm:$0x1]  ;;  %v581_v16 = vld [vmem:[#allocation2 + $0x18] sm:$0xff] }
  0x67   : > { %1035 = vmatprep.subr.bf16.mxu0 %v1248_v3 }
  0x69   : > { %684 = vmatpush1.bf16.msra.mxu1 %v1119_v17 }
  0x6a   : > { %1036 = vmatpush3.bf16.msra.mxu0 %v1105_v6  ;;  %685 = vmatprep.subr.bf16.mxu1 %v1120_v18 }
  0x6b   : > { %1037 = vmatprep.subr.bf16.mxu0 %v1248_v3 }
  0x6d   : > { %686 = vmatpush1.bf16.msra.mxu1 %v1122_v19 }
  0x6e   : > { %1038 = vmatpush3.bf16.msra.mxu0 %v1106_v7  ;;  %687 = vmatprep.subr.bf16.mxu1 %v1123_v20 }
  0x6f   : > { %1039 = vmatprep.subr.bf16.mxu0 %v1248_v3 }
  0x71   : > { %688 = vmatpush1.bf16.msra.mxu1 %v1125_v21 }
  0x72   : > { %1040 = vmatpush3.bf16.msra.mxu0 %v1107_v8  ;;  %689 = vmatprep.subr.bf16.mxu1 %v1126_v22 }
  0x73   : > { %1041 = vmatprep.subr.bf16.mxu0 %v1248_v3 }
  0x75   : > { %690 = vmatpush1.bf16.msra.mxu1 %v1128_v23 }
  0x76   : > { %1042 = vmatpush3.bf16.msra.mxu0 %v1108_v9  ;;  %691 = vmatprep.subr.bf16.mxu1 %v1129_v24 }
  0x77   : > { %1043 = vmatprep.subr.bf16.mxu0 %v1248_v3 }
  0x79   : > { %692 = vmatpush1.bf16.msra.mxu1 %v1131_v25 }
  0x7a   : > { %1044 = vmatpush3.bf16.msra.mxu0 %v1109_v10  ;;  %693 = vmatprep.subr.bf16.mxu1 %v1132_v26  ;;  %v578_v10 = vld [vmem:[#allocation2] sm:$0xff] }
  0x7d   : > { %1046 = vmatmul.mubr.bf16.vlgmr.msra.gmra.mrb[0].mxu0 %v1110_v11  ;;  %694 = vmatpush1.bf16.msra.mxu1 %v1134_v27  ;;  %v579_v11 = vld [vmem:[#allocation2 + $0x8] sm:$0xff] }
 0x150   : > { %v524_v29 = vpop.f32.mrb[0].mxu0 }
 0x151   : > { %v1047_v30 = vpop.f32.mrb[1].mxu0  ;;  %v540_v32 = vmul.f32 %v524_v29, %v524_v29 }
 0x152   : > { %v527_v31 = vpop.f32.mrb[2].mxu0 }
 0x153   : > { %v533_v33 = vadd.f32 %v527_v31, %v524_v29  ;;  %v541_v34 = vmul.f32 %v527_v31, %v527_v31  ;;  %v1048_v35 = vpop.f32.mrb[3].mxu0 }
 0x155   : > { %v534_v36 = vrot.slane %v533_v33, 4  ;;  %v542_v37 = vadd.f32 %v541_v34, %v540_v32 }
 0x157   : > { %v535_v38 = vadd.f32 %v534_v36, %v533_v33  ;;  %v543_v39 = vrot.slane %v542_v37, 4 }
 0x159   : > { %v536_v40 = vrot.slane %v535_v38, 2  ;;  %v544_v41 = vadd.f32 %v543_v39, %v542_v37 }
 0x15b   : > { %v537_v42 = vadd.f32 %v536_v40, %v535_v38  ;;  %v545_v43 = vrot.slane %v544_v41, 2 }
 0x15d   : > { %v538_v44 = vrot.slane %v537_v42, 1  ;;  %v546_v45 = vadd.f32 %v545_v43, %v544_v41 }
 0x15f   : > { %v539_v46 = vadd.f32 %v538_v44, %v537_v42  ;;  %v547_v47 = vrot.slane %v546_v45, 1 }
 0x161   : > { %v548_v48 = vadd.f32 %v547_v47, %v546_v45  ;;  %v549_v49 = vmul.f32 0.0625, %v539_v46 }
 0x163   : > { %v550_v50 = vmul.f32 0.0625, %v548_v48  ;;  %v551_v51 = vmul.f32 %v549_v49, %v549_v49 }
 0x165   : > { %v552_v52 = vsub.f32 %v550_v50, %v551_v51 }
 0x167   : > { %v553_v53 = vadd.f32 1e-05, %v552_v52 }
 0x169   : > { %1135 = vrsqrt.f32 %v553_v53 }
 0x173   : > { %v1136_v58 = vpop.eup %1135 }
 0x174   : > { %v555_v59 = vmul.f32 %v1136_v58, %v531_v56 }
 0x176   : > { %v556_v61 = vmul.f32 %v555_v59, %v549_v49  ;;  %v562_v62 = vrot.slane %v555_v59, %v1496_v57 }
 0x178   : > { %v557_v63 = vsub.f32 %v532_v60, %v556_v61  ;;  %v564_v0 = vmul.f32 %v562_v62, %v524_v29  ;;  %v565_v1 = vmul.f32 %v562_v62, %v527_v31 }
 0x17a   : > { %v570_v2 = vrot.slane %v557_v63, %v1496_v57 }
 0x17c   : > { %v573_v3 = vadd.f32 %v570_v2, %v565_v1  ;;  %v572_v4 = vadd.f32 %v570_v2, %v564_v0 }
 0x17e   : > { %v575_v5 = vmul.f32 0.2, %v573_v3  ;;  %v574_v6 = vmul.f32 0.2, %v572_v4 }
 0x180   : > { %v576_v7 = vmax.f32 %v572_v4, %v574_v6  ;;  %v577_v8 = vmax.f32 %v573_v3, %v575_v5  ;;  %v1251_v6 = vmov (!%p1014_p3), 1966171168  }
 0x182   : > { %v582_v9 = vpack.c.bf16 %v577_v8, %v576_v7  ;;  %v788_v7 = vunpack.c.l.s4 (!%p1014_p3), %v1251_v6 }
 0x184   : > { %712 = vmatmul.mubr.bf16.vlgmr.msra.gmra.mrb[0].mxu1 %v582_v9  ;;  %v789_v8 = vunpack.c.0.s8 (!%p1014_p3), %v788_v7 }
 0x257   : > { %v713_v12 = vpop.f32.mrb[0].mxu1  ;;  %733 = sbr.rel (%p1014_p3) target bundleno = 827 (0x33b), region = 72 }
 0x258   : > { %v722_v14 = vadd.f32 %v713_v12, %v578_v10  ;;  %v715_v15 = vpop.f32.mrb[1].mxu1  ;;  %v792_v10 = vsub.s32 (!%p1014_p3), %v789_v8, %v1488_v55 }
 0x259   : > { %v723_v17 = vadd.f32 %v715_v15, %v579_v11  ;;  %v717_v18 = vpop.f32.mrb[2].mxu1 }
 0x25a   : > { %726 = vst [vmem:[#allocation2] sm:$0xff] %v722_v14  ;;  %v724_v19 = vadd.f32 %v717_v18, %v580_v13  ;;  %v719_v20 = vpop.f32.mrb[3].mxu1  ;;  %v738_v14 = vld [vmem:[%s1568_s5] sm:$0x3] (!%p1014_p3) }
 0x25b   : > { %727 = vst [vmem:[#allocation2 + $0x8] sm:$0xff] %v723_v17  ;;  %v725_v21 = vadd.f32 %v719_v20, %v581_v16  ;;  %v810_v16 = vsub.s32 (!%p1014_p3), 1, %v1488_v55 }
 0x25c   : > { %728 = vst [vmem:[#allocation2 + $0x10] sm:$0xff] %v724_v19 }
 0x25d   : > { %729 = vst [vmem:[#allocation2 + $0x18] sm:$0xff] %v725_v21 }
 0x261   : > { %v1506_v22 = vld [vmem:[#allocation2] sm:$0xff] }
 0x262   : > { %v1508_v23 = vld [vmem:[#allocation2 + $0x8] sm:$0xff]  ;;  %v754_v27 = vmul.f32 %v1506_v22, %v1506_v22 }
 0x263   : > { %v1510_v24 = vld [vmem:[#allocation2 + $0x10] sm:$0xff]  ;;  %v755_v28 = vmul.f32 %v1508_v23, %v1508_v23 }
 0x264   : > { %v1512_v25 = vld [vmem:[#allocation2 + $0x18] sm:$0xff]  ;;  %v740_v26 = vadd.f32 %v1510_v24, %v1506_v22  ;;  %v756_v29 = vmul.f32 %v1510_v24, %v1510_v24 }
 0x265   : > { %v747_v30 = vadd.f32 %v1512_v25, %v1508_v23  ;;  %v757_v31 = vmul.f32 %v1512_v25, %v1512_v25 }
 0x266   : > { %v741_v32 = vrot.slane %v740_v26, 4  ;;  %v758_v33 = vadd.f32 %v756_v29, %v754_v27 }
 0x267   : > { %v748_v34 = vrot.slane %v747_v30, 4  ;;  %v765_v35 = vadd.f32 %v757_v31, %v755_v28  ;;  %v739_v28 = vld [vmem:[%s1569_s6] sm:$0x3] }
 0x268   : > { %v742_v36 = vadd.f32 %v741_v32, %v740_v26  ;;  %v759_v37 = vrot.slane %v758_v33, 4 }
 0x269   : > { %v749_v38 = vadd.f32 %v748_v34, %v747_v30  ;;  %v766_v39 = vrot.slane %v765_v35, 4 }
 0x26a   : > { %v743_v40 = vrot.slane %v742_v36, 2  ;;  %v760_v41 = vadd.f32 %v759_v37, %v758_v33 }
 0x26b   : > { %v750_v42 = vrot.slane %v749_v38, 2  ;;  %v767_v43 = vadd.f32 %v766_v39, %v765_v35 }
 0x26c   : > { %v744_v44 = vadd.f32 %v743_v40, %v742_v36  ;;  %v761_v45 = vrot.slane %v760_v41, 2  ;;  %v862_v36 = vld [vmem:[%s1570_s7] sm:$0x3] }
 0x26d   : > { %v751_v46 = vadd.f32 %v750_v42, %v749_v38  ;;  %v768_v47 = vrot.slane %v767_v43, 2 }
 0x26e   : > { %v745_v48 = vrot.slane %v744_v44, 1  ;;  %v762_v49 = vadd.f32 %v761_v45, %v760_v41 }
 0x26f   : > { %v752_v50 = vrot.slane %v751_v46, 1  ;;  %v769_v51 = vadd.f32 %v768_v47, %v767_v43 }
 0x270   : > { %v746_v52 = vadd.f32 %v745_v48, %v744_v44  ;;  %v763_v53 = vrot.slane %v762_v49, 1 }
 0x271   : > { %v753_v54 = vadd.f32 %v752_v50, %v751_v46  ;;  %v770_v56 = vrot.slane %v769_v51, 1 }
 0x272   : > { %v764_v58 = vadd.f32 %v763_v53, %v762_v49  ;;  %v772_v59 = vmul.f32 0.0625, %v746_v52  ;;  %v1015_v53 = vld [vmem:[#allocation3] ss:$0 sm:$0xff] }
 0x273   : > { %v771_v60 = vadd.f32 %v770_v56, %v769_v51  ;;  %v773_v61 = vmul.f32 0.0625, %v753_v54 }
 0x274   : > { %v774_v62 = vmul.f32 0.0625, %v764_v58  ;;  %v776_v63 = vmul.f32 %v772_v59, %v772_v59 }
 0x275   : > { %v775_v0 = vmul.f32 0.0625, %v771_v60  ;;  %v777_v1 = vmul.f32 %v773_v61, %v773_v61 }
 0x276   : > { %v778_v2 = vsub.f32 %v774_v62, %v776_v63 }
 0x277   : > { %v779_v3 = vsub.f32 %v775_v0, %v777_v1 }
 0x278   : > { %v780_v4 = vadd.f32 1e-05, %v778_v2 }
 0x279   : > { %v781_v5 = vadd.f32 1e-05, %v779_v3 }
 0x27a   : > { %1137 = vrsqrt.f32 %v780_v4 }
 0x27b   : > { %1139 = vrsqrt.f32 %v781_v5 }
 0x284   : > { %v1138_v9 = vpop.eup %1137 }
 0x285   : > { %v1140_v11 = vpop.eup %1139 }
 0x286   : > { %v786_v12 = vcombine.low %v1138_v9, %v1140_v11 }
 0x288   : > { %v793_v13 = vrot.slane %v786_v12, %v792_v10 }
 0x28a   : > { %v800_v15 = vrot.slane %v793_v13, %v792_v10 }
 0x28c   : > { %v802_v17 = vmul.f32 %v800_v15, %v738_v14 }
 0x28e   : > { %v807_v18 = vrot.slane %v802_v17, %v1496_v57  ;;  %v811_v19 = vrot.slane %v802_v17, %v810_v16 }
 0x290   : > { %v814_v20 = vmul.f32 %v807_v18, %v772_v59  ;;  %v815_v21 = vmul.f32 %v811_v19, %v773_v61  ;;  %v835_v30 = vmul.f32 %v807_v18, %v1506_v22  ;;  %v836_v32 = vmul.f32 %v811_v19, %v1508_v23 }
 0x291   : > { %v837_v55 = vmul.f32 %v807_v18, %v1510_v24  ;;  %v838_v33 = vmul.f32 %v811_v19, %v1512_v25  ;;  %v867_v22 = vrot.slane %v862_v36, %v1496_v57  ;;  %v871_v23 = vrot.slane %v862_v36, %v810_v16 }
 0x292   : > { %v818_v26 = vcombine.low %v814_v20, %v815_v21 }
 0x294   : > { %v825_v27 = vrot.slane %v818_v26, %v792_v10 }
 0x296   : > { %v832_v29 = vrot.slane %v825_v27, %v792_v10 }
 0x298   : > { %v834_v31 = vsub.f32 %v739_v28, %v832_v29 }
 0x29a   : > { %v843_v34 = vrot.slane %v834_v31, %v1496_v57  ;;  %v847_v35 = vrot.slane %v834_v31, %v810_v16 }
 0x29c   : > { %v850_v37 = vadd.f32 %v843_v34, %v835_v30  ;;  %v851_v38 = vadd.f32 %v847_v35, %v836_v32  ;;  %v852_v39 = vadd.f32 %v843_v34, %v837_v55  ;;  %v853_v40 = vadd.f32 %v847_v35, %v838_v33 }
 0x29e   : > { %v854_v41 = vmul.f32 0.2, %v850_v37  ;;  %v855_v42 = vmul.f32 0.2, %v851_v38  ;;  %v856_v43 = vmul.f32 0.2, %v852_v39 }
 0x29f   : > { %v857_v24 = vmul.f32 0.2, %v853_v40 }
 0x2a0   : > { %v858_v44 = vmax.f32 %v850_v37, %v854_v41  ;;  %v859_v25 = vmax.f32 %v851_v38, %v855_v42  ;;  %v860_v45 = vmax.f32 %v852_v39, %v856_v43 }
 0x2a1   : > { %v861_v46 = vmax.f32 %v853_v40, %v857_v24 }
 0x2a2   : > { %v874_v47 = vmul.f32 %v867_v22, %v858_v44  ;;  %v875_v48 = vmul.f32 %v871_v23, %v859_v25  ;;  %v876_v49 = vmul.f32 %v867_v22, %v860_v45 }
 0x2a3   : > { %v877_v50 = vmul.f32 %v871_v23, %v861_v46 }
 0x2a4   : > { %v878_v51 = vadd.f32 %v875_v48, %v874_v47 }
 0x2a5   : > { %v881_v52 = vadd.f32 %v877_v50, %v876_v49 }
 0x2a6   : > { %879 = vadd.xlane.f32.xlu0 %v878_v51 }
 0x2aa   : > { %882 = vadd.xlane.f32.xlu0 %v881_v52 }
 0x333   : > { %v880_v57 = vpop.xlane.xlu0 %879 }
 0x334   : > { %v891_v54 = vadd.f32 %v1015_v53, %v880_v57 }
 0x336   : > { %894 = vst.msk [vmem:[%s1572_s9] sm:$0xff] %vm893_vm1, %v891_v54 }
 0x337   : > { %v883_v56 = vpop.xlane.xlu0 %882 }
 0x338   : > { %v892_v58 = vadd.f32 %v1015_v53, %v883_v56 }
 0x33a   : > { %895 = vst.msk [vmem:[%s1572_s9 + $0x8] sm:$0xff] %vm893_vm1, %v892_v58 }
 0x33b PF: > { %p24_p6 = scmp.ge.s32.totalorder %s1327_s15, 4   ;;  %s1580_s11 = smov %s1231_s12 }
 0x33c   : > { %s1581_s12 = smov %s1235_s13  ;;  %s1582_s13 = smov %s1337_s18 }
 0x33d   : > { %s1583_s14 = smov %s1327_s15  ;;  %26 = sbr.rel (!%p24_p6) target bundleno = 8 (0x8), region = 119 }
 0x344   :  { %907 = vsyncpa [#allocation5], 1 }
 0x345   :  { %909 = vsyncpa [#allocation5 + $0x1], 1 }
 0x346   :  { %910 = vsyncpa [#allocation7], 1 }
 0x347   :  { %912 = vsyncpa [#allocation7 + $0x1], 1 }

</bundles_post_ra>
